<compile_context>
chip_gen: v7x
topology: tpu7x:2x2x1
jax: 0.10.0
libtpu: 0.0.40
codegen_flags: <defaults>
</compile_context>

<pallas_src>
import functools

import jax
import jax.numpy as jnp
from jax.experimental import pallas as pl
from jax.experimental.pallas import tpu as pltpu


def _cdiv(a, b):
    return (a + b - 1) // b


def _round_up(x, m):
    return _cdiv(x, m) * m


def _sublane_min(dtype):
    """Minimum second-minor (sublane) tile for a packed dtype: 8/16/32."""
    return 8 * max(1, 4 // jnp.dtype(dtype).itemsize)


def _balanced_tile(dim, cap, align):
    """Largest tile <= cap that divides the align-rounded dim with minimal padding."""
    dim_r = _round_up(max(dim, 1), align)
    if dim_r <= cap:
        return dim_r
    steps = _cdiv(dim_r, cap)
    return _round_up(_cdiv(dim_r, steps), align)


def _vmem_capacity_bytes():
    """Per-core VMEM capacity; conservative fallback (v7x = 64 MiB) if unqueryable."""
    try:
        return int(pltpu.get_tpu_info().vmem_capacity_bytes)
    except Exception:
        return 64 << 20


def _rpl_kernel(*refs, use_bias, use_acc, precision):
    """One (tm, tn) output tile of X @ W^T (+ b), accumulating over the K grid axis.

    Ref order: x (tm,tk), wt (tk,tn), [bias (1,tn)], out (tm,tn), [acc (tm,tn) f32].
    When use_acc is False the f32 output block itself is the accumulator
    (it is resident across the k axis), saving tm*tn*4 bytes of VMEM and the
    final copy pass.
    """
    idx = 0
    x_ref = refs[idx]; idx += 1
    wt_ref = refs[idx]; idx += 1
    b_ref = None
    if use_bias:
        b_ref = refs[idx]; idx += 1
    o_ref = refs[idx]; idx += 1
    acc_ref = refs[idx] if use_acc else o_ref

    k = pl.program_id(2)

    @pl.when(k == 0)
    def _():
        # Fold the bias into the accumulator init (no epilogue add, no zero fill).
        if use_bias:
            acc_ref[...] = jnp.broadcast_to(
                b_ref[...].astype(acc_ref.dtype), acc_ref.shape)
        else:
            acc_ref[...] = jnp.zeros_like(acc_ref)

    acc_ref[...] += jnp.dot(
        x_ref[...], wt_ref[...],
        preferred_element_type=jnp.float32,
        precision=precision,
    ).astype(acc_ref.dtype)

    if use_acc:
        @pl.when(k == pl.num_programs(2) - 1)
        def _():
            o_ref[...] = acc_ref[...].astype(o_ref.dtype)


def prepare_weight(weight, compute_dtype=None):
    """Pre-transpose (and cast) the [N, K] weight to the [K, N] layout the kernel
    consumes. Call once for static weights and pass the result as weight_t=."""
    cd = jnp.dtype(compute_dtype) if compute_dtype is not None else weight.dtype
    return weight.T.astype(cd)


def row_parallel_linear(input_, weight=None, bias=None, *, weight_t=None,
                        compute_dtype=None, precision=None,
                        tm=None, tn=None, tk=None):
    """Pallas implementation of RowParallelLinear.forward (world_size == 1).

    input_: [S, B, K]   weight: [N, K] (or weight_t: [K, N])   bias: [N] or None
    -> output: [S, B, N]

    compute_dtype: optional dtype (e.g. jnp.bfloat16) to cast X/W to before the
        matmul; accumulation stays f32. Default keeps the input dtype.
    precision: optional jax.lax.Precision for the MXU dot (HIGHEST for exact-f32).
    """
    S, B, K = input_.shape
    M = S * B
    out_dtype = jnp.dtype(input_.dtype)
    cd = jnp.dtype(compute_dtype) if compute_dtype is not None else out_dtype

    if weight_t is None:
        assert weight is not None, "pass weight or weight_t"
        N, Kw = weight.shape
        assert K == Kw, "hidden / input_size_per_partition mismatch"
        wt = weight.T.astype(cd)  # per-call transpose; hoist via prepare_weight()
    else:
        Kw, N = weight_t.shape
        assert K == Kw, "hidden / input_size_per_partition mismatch"
        wt = weight_t.astype(cd)

    use_bias = bias is not None
    use_acc = out_dtype != jnp.float32   # f32 outputs accumulate in-place

    # ---- tile selection: large, MXU-aligned, balanced (minimal padding) ----
    sub_m = max(_sublane_min(cd), _sublane_min(out_dtype))
    if tm is None:
        tm = _balanced_tile(M, 512, sub_m)
    if tk is None:
        tk = _balanced_tile(K, 2048, 128)
    if tn is None:
        tn = _balanced_tile(N, 512, 128)
        # Megacore: if the whole output would be one tile, split N so both
        # TensorCores (v7x) have work on the ("parallel","parallel") axes.
        n_r = _round_up(N, 128)
        if _cdiv(M, max(tm, 1)) == 1 and _cdiv(n_r, tn) == 1 and n_r >= 256:
            tn = _round_up(_cdiv(n_r, 2), 128)
    tm = _round_up(tm, sub_m)
    tn = _round_up(tn, 128)
    tk = _round_up(tk, 128)

    cd_b = cd.itemsize
    out_b = out_dtype.itemsize

    def _w_bufs(tm_, tk_):
        # Decode-like shapes (small M, long K reduction) are weight-DMA bound:
        # request a 3-deep weight pipeline there.
        k_steps = _round_up(K, tk_) // tk_
        return 3 if (_round_up(M, tm_) <= 256 and k_steps >= 4) else 2

    def _vmem_need(tm_, tn_, tk_, wb):
        return (2 * tm_ * tk_ * cd_b                 # X double-buffered
                + wb * tk_ * tn_ * cd_b              # W^T buffers
                + 2 * tm_ * tn_ * out_b              # output double-buffered
                + (tm_ * tn_ * 4 if use_acc else 0)  # f32 accumulator scratch
                + (2 * tn_ * 4 if use_bias else 0))  # bias

    vmem_cap = _vmem_capacity_bytes()
    budget = int(vmem_cap * 0.8)                     # headroom for Mosaic scratch

    w_buffers = _w_bufs(tm, tk)
    # Shrink tiles (K first, then N, then M) if the config overruns the budget.
    while _vmem_need(tm, tn, tk, w_buffers) + (4 << 20) > budget:
        if tk > 512:
            tk = _round_up(tk // 2, 128)
        elif tn > 256:
            tn = _round_up(tn // 2, 128)
        elif tm > max(256, sub_m):
            tm = _round_up(max(tm // 2, sub_m), sub_m)
        else:
            break
        w_buffers = _w_bufs(tm, tk)

    M_pad = _round_up(M, tm)
    N_pad = _round_up(N, tn)
    K_pad = _round_up(K, tk)

    # Layout: 2D row-major slab X=[M,K]; W^T=[K,N] lane-dense along N; f32 [1,N] bias.
    x2d = input_.reshape(M, K).astype(cd)
    if (M_pad, K_pad) != (M, K):
        x2d = jnp.pad(x2d, ((0, M_pad - M), (0, K_pad - K)))
    if (K_pad, N_pad) != (K, N):
        wt = jnp.pad(wt, ((0, K_pad - K), (0, N_pad - N)))

    operands = [x2d, wt]
    if w_buffers == 2:
        w_spec = pl.BlockSpec((tk, tn), lambda i, j, k: (k, j))
    else:
        w_spec = pl.BlockSpec((tk, tn), lambda i, j, k: (k, j),
                              pipeline_mode=pl.Buffered(w_buffers))
    in_specs = [
        pl.BlockSpec((tm, tk), lambda i, j, k: (i, k)),   # X tile
        w_spec,                                           # W^T tile
    ]
    if use_bias:
        b2d = bias.reshape(1, N).astype(jnp.float32)
        if N_pad != N:
            b2d = jnp.pad(b2d, ((0, 0), (0, N_pad - N)))
        operands.append(b2d)
        in_specs.append(pl.BlockSpec((1, tn), lambda i, j, k: (0, j)))

    scratch_shapes = [pltpu.VMEM((tm, tn), jnp.float32)] if use_acc else []

    grid = (M_pad // tm, N_pad // tn, K_pad // tk)
    m_steps, n_steps = grid[0], grid[1]

    need = _vmem_need(tm, tn, tk, w_buffers)
    vmem_limit = int(min(max(need * 3 // 2 + (4 << 20), 32 << 20), budget))
    vmem_limit = max(vmem_limit, min(need + (2 << 20), budget))

    cost = pl.CostEstimate(
        flops=2 * M_pad * N_pad * K_pad,
        transcendentals=0,
        bytes_accessed=(n_steps * M_pad * K_pad * cd_b      # X re-streamed per N tile
                        + m_steps * K_pad * N_pad * cd_b    # W re-streamed per M tile
                        + M_pad * N_pad * out_b
                        + (N_pad * 4 if use_bias else 0)),
    )

    kernel = functools.partial(_rpl_kernel, use_bias=use_bias, use_acc=use_acc,
                               precision=precision)

    out2d = pl.pallas_call(
        kernel,
        out_shape=jax.ShapeDtypeStruct((M_pad, N_pad), out_dtype),
        grid_spec=pltpu.PrefetchScalarGridSpec(
            num_scalar_prefetch=0,
            grid=grid,
            in_specs=in_specs,
            out_specs=pl.BlockSpec((tm, tn), lambda i, j, k: (i, j)),
            scratch_shapes=scratch_shapes,
        ),
        compiler_params=pltpu.CompilerParams(
            dimension_semantics=("parallel", "parallel", "arbitrary"),
            vmem_limit_bytes=vmem_limit,
        ),
        cost_estimate=cost,
    )(*operands)

    if (M_pad, N_pad) != (M, N):
        out2d = out2d[:M, :N]
    return out2d.reshape(S, B, N)


def make_params(input_size, output_size, world_size, dtype, key):
    """Deterministic parameter init matching RowParallelLinear.__init__.

    weight: [output_size, input_size_per_partition], xavier_normal_
    bias:   [output_size], zeros
    """
    input_size_per_partition = input_size // world_size
    std = (2.0 / (input_size_per_partition + output_size)) ** 0.5
    weight = std * jax.random.normal(
        key, (output_size, input_size_per_partition), dtype=jnp.float32
    )
    weight = weight.astype(dtype)
    bias = jnp.zeros((output_size,), dtype=dtype)
    return weight, bias


if __name__ == "__main__":
    world_size = 1
    dtype = jnp.float32
    key = jax.random.PRNGKey(0)
    k_w, k_x, k_x2 = jax.random.split(key, 3)

    # ---- case 1: small aligned config (f32, exact MXU precision) ----
    seq, batch = 8, 2
    input_size, output_size = 256, 128
    weight, bias = make_params(input_size, output_size, world_size, dtype, k_w)
    x = jax.random.normal(k_x, (seq, batch, input_size // world_size), dtype=dtype)

    out = jax.block_until_ready(
        row_parallel_linear(x, weight, bias, precision=jax.lax.Precision.HIGHEST)
    )
    ref = jnp.einsum("sbk,nk->sbn", x, weight) + bias
    assert out.shape == (seq, batch, output_size)
    assert jnp.allclose(out, ref, atol=1e-4, rtol=1e-4), "f32 mismatch vs reference"

    # ---- case 1b: pre-transposed (hoisted) weight path gives the same answer ----
    wt_prepared = prepare_weight(weight)
    out_prep = jax.block_until_ready(
        row_parallel_linear(x, None, bias, weight_t=wt_prepared,
                            precision=jax.lax.Precision.HIGHEST)
    )
    assert jnp.allclose(out_prep, ref, atol=1e-4, rtol=1e-4), "prepared-weight mismatch"

    # ---- case 2: non-divisible M and N (padding path + megacore N split) ----
    seq2, batch2, out2_size = 5, 3, 192
    weight2, bias2 = make_params(input_size, out2_size, world_size, dtype, k_w)
    x2 = jax.random.normal(k_x2, (seq2, batch2, input_size), dtype=dtype)
    out_pad = jax.block_until_ready(row_parallel_linear(x2, weight2, bias2))
    ref_pad = jnp.einsum("sbk,nk->sbn", x2, weight2) + bias2
    assert out_pad.shape == (seq2, batch2, out2_size)
    assert jnp.allclose(out_pad, ref_pad, atol=1e-4, rtol=1e-4), "padded mismatch"

    # ---- case 3: bf16 compute path (f32 accumulation), looser tolerance ----
    out_bf16 = jax.block_until_ready(
        row_parallel_linear(x, weight, bias, compute_dtype=jnp.bfloat16)
    )
    ref_bf16 = (
        jnp.einsum(
            "sbk,nk->sbn",
            x.astype(jnp.bfloat16).astype(jnp.float32),
            weight.astype(jnp.bfloat16).astype(jnp.float32),
        )
        + bias
    )
    assert jnp.allclose(out_bf16, ref_bf16, atol=1e-2, rtol=1e-2), "bf16 mismatch"

    # ---- case 4: bias=None path (bias stream skipped, zero-init accumulator) ----
    out_nob = jax.block_until_ready(row_parallel_linear(x, weight, None))
    ref_nob = jnp.einsum("sbk,nk->sbn", x, weight)
    assert jnp.allclose(out_nob, ref_nob, atol=1e-3, rtol=1e-3), "no-bias mismatch"

    print("KERNEL_OK")
</pallas_src>

<mosaic_0001>
module attributes {stable_mosaic.version = 11 : i64} {
  func.func @_rpl_kernel(%arg0: i32, %arg1: i32, %arg2: i32, %arg3: memref<16x256xf32, #tpu.memory_space<vmem>>, %arg4: memref<256x128xf32, #tpu.memory_space<vmem>>, %arg5: memref<1x128xf32, #tpu.memory_space<vmem>>, %arg6: memref<16x128xf32, #tpu.memory_space<vmem>>) attributes {dimension_semantics = [#tpu.dimension_semantics<parallel>, #tpu.dimension_semantics<parallel>, #tpu.dimension_semantics<arbitrary>], iteration_bounds = array<i64: 1, 1, 1>, scalar_prefetch = 0 : i64, scratch_operands = 0 : i64, tpu.core_type = #tpu.core_type<tc>, window_params = [{transform_indices = @transform_0, window_bounds = array<i64: 16, 256>}, {transform_indices = @transform_1, window_bounds = array<i64: 256, 128>}, {transform_indices = @transform_2, window_bounds = array<i64: 1, 128>}, {transform_indices = @transform_3, window_bounds = array<i64: 16, 128>}]} {
    %c0_i32 = arith.constant 0 : i32
    %0 = arith.cmpi eq, %arg2, %c0_i32 : i32
    %1 = arith.extui %0 : i1 to i32
    %c0_i32_0 = arith.constant 0 : i32
    %2 = arith.cmpi ne, %1, %c0_i32_0 : i32
    scf.if %2 {
      %c0_8 = arith.constant 0 : index
      %c0_9 = arith.constant 0 : index
      %9 = vector.load %arg5[%c0_8, %c0_9] : memref<1x128xf32, #tpu.memory_space<vmem>>, vector<1x128xf32>
      %10 = vector.shape_cast %9 : vector<1x128xf32> to vector<1x128xf32>
      %11 = vector.broadcast %10 : vector<1x128xf32> to vector<16x128xf32>
      %c0_10 = arith.constant 0 : index
      %c0_11 = arith.constant 0 : index
      %12 = vector.load %arg6[%c0_10, %c0_11] : memref<16x128xf32, #tpu.memory_space<vmem>>, vector<16x128xf32>
      tpu.vector_store %arg6[%c0_10, %c0_11], %11 {strides = array<i32>} : memref<16x128xf32, #tpu.memory_space<vmem>>, vector<16x128xf32>,
    } else {
    }
    %c0 = arith.constant 0 : index
    %c0_1 = arith.constant 0 : index
    %3 = vector.load %arg6[%c0, %c0_1] : memref<16x128xf32, #tpu.memory_space<vmem>>, vector<16x128xf32>
    %c0_2 = arith.constant 0 : index
    %c0_3 = arith.constant 0 : index
    %4 = vector.load %arg3[%c0_2, %c0_3] : memref<16x256xf32, #tpu.memory_space<vmem>>, vector<16x256xf32>
    %c0_4 = arith.constant 0 : index
    %c0_5 = arith.constant 0 : index
    %5 = vector.load %arg4[%c0_4, %c0_5] : memref<256x128xf32, #tpu.memory_space<vmem>>, vector<256x128xf32>
    %cst = arith.constant dense<0.000000e+00> : vector<16x128xf32>
    %6 = tpu.matmul %4, %5, %cst {dimension_numbers = #tpu.dot_dimension_numbers<[1], [0], [0], [1], [0, 0, 1, 1], [], []>, precision = #tpu.contract_precision<fp32>} : vector<16x256xf32>, vector<256x128xf32>, vector<16x128xf32> -> vector<16x128xf32>
    %7 = arith.addf %3, %6 : vector<16x128xf32>
    %c0_6 = arith.constant 0 : index
    %c0_7 = arith.constant 0 : index
    %8 = vector.load %arg6[%c0_6, %c0_7] : memref<16x128xf32, #tpu.memory_space<vmem>>, vector<16x128xf32>
    tpu.vector_store %arg6[%c0_6, %c0_7], %7 {strides = array<i32>} : memref<16x128xf32, #tpu.memory_space<vmem>>, vector<16x128xf32>,
    return
  }
  func.func @transform_0(%arg0: i32, %arg1: i32, %arg2: i32) -> (i32, i32) {
    %c0_i32 = arith.constant 0 : i32
    return %arg0, %arg2 : i32, i32
  }
  func.func @transform_1(%arg0: i32, %arg1: i32, %arg2: i32) -> (i32, i32) {
    %c0_i32 = arith.constant 0 : i32
    return %arg2, %arg1 : i32, i32
  }
  func.func @transform_2(%arg0: i32, %arg1: i32, %arg2: i32) -> (i32, i32) {
    %c0_i32 = arith.constant 0 : i32
    %c0_i32_0 = arith.constant 0 : i32
    return %c0_i32, %arg1 : i32, i32
  }
  func.func @transform_3(%arg0: i32, %arg1: i32, %arg2: i32) -> (i32, i32) {
    %c0_i32 = arith.constant 0 : i32
    return %arg0, %arg1 : i32, i32
  }
}

</mosaic_0001>

<bundles_post_ra>
// kernel: tpu_custom_call.1
= control target key start
LH: loop header
LB: loop body
LE: loop exit
PB: predicated region body
PF: predicated region fallthrough
CT: control target
= control target key end

     0   :  { %8 = vsyncpa [#allocation3], 0  ;;  %s2046_s0 = inlined_call_operand.hbm [shape: f32[16,256], index: 0, kind: input, shape index: {}]   ;;  %s2047_s1 = inlined_call_operand.hbm [shape: f32[256,128], index: 1, kind: input, shape index: {}]   ;;  %s2048_s2 = inlined_call_operand.vmem [shape: f32[1,128], index: 2, kind: input, shape index: {}]   ;;  %s2049_s3 = inlined_call_operand.hbm [shape: f32[16,128], index: 3, kind: output, shape index: {}]  }
   0x1   :  { %9 = vsyncpa [#allocation6], 0 }
   0x2   :  { %10 = vsyncpa [#allocation4], 0  ;;  %s1534_s12 = smov [#allocation2]   ;;  %s1462_s16 = scalar_lea.hbm %s2046_s0, 512 }
   0x3   :  { %s16_s13 = sshll.u32 %s1534_s12, 4  ;;  %p1463_p0 = scmp.ne.s32.totalorder %s2046_s0, %s1462_s16  ;;  %s17_s13 = int_to_ptr.vmem [resolvable:$true] %s16_s13 }
   0x4   :  { %p1466_p1 = scmp.lt.u32.totalorder %s1462_s16, %s2046_s0 }
   0x6   :  { %p1468_p2 = pnand %p1466_p1, %p1463_p0 }
   0x8   :  { %1471 = shalt.err (!%p1468_p2)
}
   0x9   :  { %s1472_s21 = scalar_lea.vmem %s17_s13, 512  ;;  %p1477_p4 = scmp.lt.s32.totalorder %s17_s13, %s17_s13 }
   0xa   :  { %p1473_p3 = scmp.ne.s32.totalorder %s17_s13, %s1472_s21  ;;  %p1478_p5 = scmp.lt.s32.totalorder %s1472_s21, %s1472_s21 }
   0xc   :  { %p1479_p6 = por %p1478_p5, %p1477_p4 }
   0xe   :  { %p1480_p7 = pnand %p1479_p6, %p1473_p3 }
  0x10   :  { %1483 = shalt.err (!%p1480_p7)
}
  0x11   :  { %s1535_s22 = smov 256   ;;  %s1536_s23 = smov 16  }
  0x12   :  { %22 = dma.hbm_to_vmem [thread:$0]  %s2046_s0, 512, %s17_s13, [#allocation3], %s1535_s22, %s1535_s22, %s1536_s23  }
  0x13   :  { %s1537_s26 = smov [#allocation5]   ;;  %s1484_s30 = scalar_lea.hbm %s2047_s1, 4096 }
  0x14   :  { %s28_s27 = sshll.u32 %s1537_s26, 4  ;;  %p1485_p8 = scmp.ne.s32.totalorder %s2047_s1, %s1484_s30  ;;  %s29_s27 = int_to_ptr.vmem [resolvable:$true] %s28_s27 }
  0x15   :  { %p1488_p9 = scmp.lt.u32.totalorder %s1484_s30, %s2047_s1 }
  0x17   :  { %p1490_p10 = pnand %p1488_p9, %p1485_p8 }
  0x19   :  { %1493 = shalt.err (!%p1490_p10)
}
  0x1a   :  { %s1494_s8 = scalar_lea.vmem %s29_s27, 4096  ;;  %p1499_p12 = scmp.lt.s32.totalorder %s29_s27, %s29_s27 }
  0x1b   :  { %p1495_p11 = scmp.ne.s32.totalorder %s29_s27, %s1494_s8  ;;  %p1500_p13 = scmp.lt.s32.totalorder %s1494_s8, %s1494_s8 }
  0x1d   :  { %p1501_p0 = por %p1500_p13, %p1499_p12 }
  0x1f   :  { %p1502_p1 = pnand %p1501_p0, %p1495_p11 }
  0x21   :  { %1505 = shalt.err (!%p1502_p1)
}
  0x22   :  { %s1538_s0 = smov 128   ;;  %s1539_s9 = smov 8  }
  0x23   :  { %34 = dma.hbm_to_vmem [thread:$0]  %s2047_s1, 4096, %s29_s27, [#allocation6], %s1538_s0, %s1538_s0, %s1539_s9  }
  0x24   :  { %1528 = dma.done.wait [#allocation3], 512  }
  0x25   :  { %1529 = vsyncadd [#allocation3], 4294966784 }
  0x26   :  { %1530 = dma.done.wait [#allocation6], 4096  }
  0x27   :  { %1531 = vsyncadd [#allocation6], 4294963200  ;;  %v78_v0 = vld [vmem:[#allocation5 + $0x80] sm:$0xff]  ;;  %v79_v1 = vld [vmem:[#allocation5 + $0x88] sm:$0xff]  ;;  %s1540_s13 = smov [#allocation7]  }
  0x28   :  { %v62_v2 = vld [vmem:[#allocation5] sm:$0xff]  ;;  %v143_v3 = vand.u32 4294901760, %v78_v0  ;;  %v146_v4 = vand.u32 4294901760, %v79_v1  ;;  %v63_v5 = vld [vmem:[#allocation5 + $0x8] sm:$0xff]  ;;  %v80_v7 = vld [vmem:[#allocation5 + $0x90] sm:$0xff]  ;;  %s1021_s14 = sshll.u32 %s1540_s13, 4  ;;  %s1022_s14 = int_to_ptr.vmem [resolvable:$true] %s1021_s14 }
  0x29   :  { %v95_v6 = vand.u32 4294901760, %v62_v2  ;;  %v81_v8 = vld [vmem:[#allocation5 + $0x98] sm:$0xff]  ;;  %v98_v9 = vand.u32 4294901760, %v63_v5  ;;  %v149_v10 = vand.u32 4294901760, %v80_v7  ;;  %v64_v12 = vld [vmem:[#allocation5 + $0x10] sm:$0xff]  ;;  %v82_v18 = vld [vmem:[#allocation5 + $0xa0] sm:$0xff]  ;;  %p1511_p3 = scmp.lt.s32.totalorder %s1022_s14, %s1022_s14 }
  0x2a   :  { %v152_v11 = vand.u32 4294901760, %v81_v8  ;;  %v65_v13 = vld [vmem:[#allocation5 + $0x18] sm:$0xff]  ;;  %v1588_v14 = vpack.c.bf16 %v146_v4, %v143_v3  ;;  %v101_v16 = vand.u32 4294901760, %v64_v12  ;;  %v83_v19 = vld [vmem:[#allocation5 + $0xa8] sm:$0xff]  ;;  %v66_v23 = vld [vmem:[#allocation5 + $0x20] sm:$0xff]  ;;  %v155_v29 = vand.u32 4294901760, %v82_v18 }
  0x2b   :  { %v1590_v15 = vsub.f32 %v62_v2, %v95_v6  ;;  %v104_v17 = vand.u32 4294901760, %v65_v13  ;;  %v1592_v20 = vpack.c.bf16 %v98_v9, %v95_v6  ;;  %v1594_v21 = vsub.f32 %v63_v5, %v98_v9  ;;  %v67_v24 = vld [vmem:[#allocation5 + $0x28] sm:$0xff]  ;;  %v84_v37 = vld [vmem:[#allocation5 + $0xb0] sm:$0xff]  ;;  %v85_v42 = vld [vmem:[#allocation5 + $0xb8] sm:$0xff]  ;;  %s1506_s15 = scalar_lea.vmem %s1022_s14, 256 }
  0x2c   :  { %v1596_v22 = vpack.c.bf16 %v152_v11, %v149_v10  ;;  %1264 = vmatprep.subr.bf16.mxu0 %v1588_v14  ;;  %v1599_v25 = vsub.f32 %v80_v7, %v149_v10  ;;  %v1601_v26 = vsub.f32 %v81_v8, %v152_v11  ;;  %v1605_v28 = vsub.f32 %v64_v12, %v101_v16  ;;  %v68_v55 = vld [vmem:[#allocation5 + $0x30] sm:$0xff]  ;;  %v69_v56 = vld [vmem:[#allocation5 + $0x38] sm:$0xff]  ;;  %v86_v5 = vld [vmem:[#allocation5 + $0xc0] sm:$0xff]  ;;  %p1507_p2 = scmp.ne.s32.totalorder %s1022_s14, %s1506_s15  ;;  %p1512_p4 = scmp.lt.s32.totalorder %s1506_s15, %s1506_s15 }
  0x2d   :  { %v1603_v27 = vpack.c.bf16 %v104_v17, %v101_v16  ;;  %1266 = vmatpush3.bf16.msra.mxu0 %v1592_v20  ;;  %v158_v30 = vand.u32 4294901760, %v83_v19  ;;  %v1608_v31 = vsub.f32 %v78_v0, %v143_v3  ;;  %v1610_v32 = vsub.f32 %v79_v1, %v146_v4  ;;  %v87_v6 = vld [vmem:[#allocation5 + $0xc8] sm:$0xff]  ;;  %v70_v11 = vld [vmem:[#allocation5 + $0x40] sm:$0xff] }
  0x2e   :  { %1268 = vmatprep.subr.bf16.mxu0 %v1596_v22  ;;  %v107_v33 = vand.u32 4294901760, %v66_v23  ;;  %v110_v34 = vand.u32 4294901760, %v67_v24  ;;  %v2065_v35 = vand.u32 4294901760, %v1590_v15  ;;  %v2064_v36 = vand.u32 4294901760, %v1594_v21  ;;  %p1513_p5 = por %p1512_p4, %p1511_p3 }
  0x2f   :  { %v1615_v38 = vsub.f32 %v65_v13, %v104_v17  ;;  %v1617_v39 = vpack.c.bf16 %v158_v30, %v155_v29  ;;  %v1619_v40 = vsub.f32 %v82_v18, %v155_v29  ;;  %v2069_v41 = vand.u32 4294901760, %v1608_v31  ;;  %v71_v29 = vld [vmem:[#allocation5 + $0x48] sm:$0xff] }
  0x30   :  { %v1622_v43 = vsub.f32 %v83_v19, %v158_v30  ;;  %v2067_v44 = vand.u32 4294901760, %v1610_v32  ;;  %v1625_v45 = vpack.c.bf16 %v110_v34, %v107_v33  ;;  %v1627_v46 = vsub.f32 %v66_v23, %v107_v33  ;;  %p1514_p6 = pnand %p1513_p5, %p1507_p2 }
  0x31   :  { %1270 = vmatpush3.bf16.msra.mxu0 %v1603_v27  ;;  %v337_v47 = vsub.f32 %v1608_v31, %v2069_v41  ;;  %v225_v48 = vsub.f32 %v1590_v15, %v2065_v35  ;;  %v232_v49 = vsub.f32 %v1594_v21, %v2064_v36  ;;  %v161_v50 = vand.u32 4294901760, %v84_v37  ;;  %v59_v41 = vld [vmem:[#allocation2 + $0x8] sm:$0xff] }
  0x32   :  { %1272 = vmatprep.subr.bf16.mxu0 %v1617_v39  ;;  %v344_v51 = vsub.f32 %v1610_v32, %v2067_v44  ;;  %v164_v52 = vand.u32 4294901760, %v85_v42  ;;  %v2062_v53 = vand.u32 4294901760, %v1599_v25  ;;  %v2060_v54 = vand.u32 4294901760, %v1601_v26 }
  0x33   :  { %v338_v57 = vand.u32 4294901760, %v337_v47  ;;  %v1645_v58 = vsub.f32 %v67_v24, %v110_v34  ;;  %v226_v59 = vand.u32 4294901760, %v225_v48  ;;  %v233_v60 = vand.u32 4294901760, %v232_v49 }
  0x34   :  { %v345_v61 = vand.u32 4294901760, %v344_v51  ;;  %v1647_v62 = vpack.c.bf16 %v164_v52, %v161_v50  ;;  %v1649_v63 = vsub.f32 %v84_v37, %v161_v50  ;;  %v351_v0 = vsub.f32 %v1599_v25, %v2062_v53 }
  0x35   :  { %1274 = vmatpush3.bf16.msra.mxu0 %v1625_v45  ;;  %v1297_v1 = vpack.c.bf16 %v233_v60, %v226_v59  ;;  %v358_v2 = vsub.f32 %v1601_v26, %v2060_v54  ;;  %v113_v3 = vand.u32 4294901760, %v68_v55  ;;  %v116_v4 = vand.u32 4294901760, %v69_v56  ;;  %v89_v59 = vld [vmem:[#allocation5 + $0xd8] sm:$0xff] }
  0x36   :  { %v1295_v7 = vpack.c.bf16 %v345_v61, %v338_v57  ;;  %1276 = vmatprep.subr.bf16.mxu0 %v1647_v62  ;;  %v352_v8 = vand.u32 4294901760, %v351_v0  ;;  %v2059_v9 = vand.u32 4294901760, %v1605_v28  ;;  %v2057_v10 = vand.u32 4294901760, %v1615_v38  ;;  %v88_v57 = vld [vmem:[#allocation5 + $0xd0] sm:$0xff]  ;;  %v93_v54 = vld [vmem:[#allocation5 + $0xf8] sm:$0xff] }
  0x37   :  { %v1661_v12 = vsub.f32 %v85_v42, %v164_v52  ;;  %v359_v13 = vand.u32 4294901760, %v358_v2  ;;  %v1663_v16 = vpack.c.bf16 %v116_v4, %v113_v3  ;;  %v1665_v17 = vsub.f32 %v68_v55, %v113_v3 }
  0x38   :  { %1296 = vmatprep.subr.bf16.mxu1 %v1295_v7  ;;  %v239_v18 = vsub.f32 %v1605_v28, %v2059_v9  ;;  %v246_v19 = vsub.f32 %v1615_v38, %v2057_v10  ;;  %v167_v23 = vand.u32 4294901760, %v86_v5  ;;  %v170_v24 = vand.u32 4294901760, %v87_v6  ;;  %v92_v9 = vld [vmem:[#allocation5 + $0xf0] sm:$0xff] }
  0x39   :  { %1298 = vmatpush3.bf16.msra.mxu1 %v1297_v1  ;;  %v1299_v30 = vpack.c.bf16 %v359_v13, %v352_v8  ;;  %1278 = vmatpush3.bf16.msra.mxu0 %v1663_v16  ;;  %v2055_v33 = vand.u32 4294901760, %v1619_v40  ;;  %v2054_v34 = vand.u32 4294901760, %v1622_v43  ;;  %v119_v37 = vand.u32 4294901760, %v70_v11  ;;  %v72_v1 = vld [vmem:[#allocation5 + $0x50] sm:$0xff] }
  0x3a   :  { %v1676_v42 = vsub.f32 %v69_v56, %v116_v4  ;;  %v240_v47 = vand.u32 4294901760, %v239_v18  ;;  %v247_v48 = vand.u32 4294901760, %v246_v19  ;;  %v1678_v49 = vpack.c.bf16 %v170_v24, %v167_v23  ;;  %v73_v18 = vld [vmem:[#allocation5 + $0x58] sm:$0xff] }
  0x3b   :  { %1300 = vmatprep.subr.bf16.mxu1 %v1299_v30  ;;  %v1680_v50 = vsub.f32 %v86_v5, %v167_v23  ;;  %v365_v51 = vsub.f32 %v1619_v40, %v2055_v33  ;;  %v372_v52 = vsub.f32 %v1622_v43, %v2054_v34  ;;  %v122_v55 = vand.u32 4294901760, %v71_v29 }
  0x3c   :  { %v1301_v56 = vpack.c.bf16 %v247_v48, %v240_v47  ;;  %1280 = vmatprep.subr.bf16.mxu0 %v1678_v49  ;;  %v1689_v60 = vsub.f32 %v87_v6, %v170_v24  ;;  %v2052_v61 = vand.u32 4294901760, %v1627_v46  ;;  %v2050_v0 = vand.u32 4294901760, %v1645_v58 }
  0x3d   :  { %v366_v2 = vand.u32 4294901760, %v365_v51  ;;  %v373_v3 = vand.u32 4294901760, %v372_v52  ;;  %v1693_v4 = vpack.c.bf16 %v122_v55, %v119_v37  ;;  %v1695_v5 = vsub.f32 %v70_v11, %v119_v37 }
  0x3e   :  { %1302 = vmatpush3.bf16.msra.mxu1 %v1301_v56  ;;  %v253_v7 = vsub.f32 %v1627_v46, %v2052_v61  ;;  %v260_v6 = vsub.f32 %v1645_v58, %v2050_v0  ;;  %v173_v8 = vand.u32 4294901760, %v88_v57  ;;  %v176_v13 = vand.u32 4294901760, %v89_v59  ;;  %v91_v0 = vld [vmem:[#allocation5 + $0xe8] sm:$0xff] }
  0x3f   :  { %v1303_v19 = vpack.c.bf16 %v373_v3, %v366_v2  ;;  %1282 = vmatpush3.bf16.msra.mxu0 %v1693_v4  ;;  %v2051_v23 = vand.u32 4294901760, %v1649_v63  ;;  %v2053_v11 = vand.u32 4294901760, %v1661_v12  ;;  %v125_v24 = vand.u32 4294901760, %v72_v1  ;;  %v90_v3 = vld [vmem:[#allocation5 + $0xe0] sm:$0xff] }
  0x40   :  { %v1706_v30 = vsub.f32 %v71_v29, %v122_v55  ;;  %v254_v37 = vand.u32 4294901760, %v253_v7  ;;  %v261_v47 = vand.u32 4294901760, %v260_v6  ;;  %v1708_v48 = vpack.c.bf16 %v176_v13, %v173_v8  ;;  %v74_v6 = vld [vmem:[#allocation5 + $0x60] sm:$0xff] }
  0x41   :  { %1304 = vmatprep.subr.bf16.mxu1 %v1303_v19  ;;  %v1710_v51 = vsub.f32 %v88_v57, %v173_v8  ;;  %v379_v52 = vsub.f32 %v1649_v63, %v2051_v23  ;;  %v386_v56 = vsub.f32 %v1661_v12, %v2053_v11  ;;  %v128_v2 = vand.u32 4294901760, %v73_v18  ;;  %v75_v11 = vld [vmem:[#allocation5 + $0x68] sm:$0xff] }
  0x42   :  { %2100 = vst [vmem:[#allocation11_spill] sm:$0xff] %v1708_v48  ;;  %v1305_v29 = vpack.c.bf16 %v261_v47, %v254_v37  ;;  %1284 = vmatprep.subr.bf16.mxu0 %v1708_v48  ;;  %v1719_v55 = vsub.f32 %v89_v59, %v176_v13  ;;  %v2056_v7 = vand.u32 4294901760, %v1665_v17  ;;  %v2058_v57 = vand.u32 4294901760, %v1676_v42 }
  0x43   :  { %v380_v8 = vand.u32 4294901760, %v379_v52  ;;  %v387_v19 = vand.u32 4294901760, %v386_v56  ;;  %v1723_v23 = vpack.c.bf16 %v128_v2, %v125_v24  ;;  %v1725_v61 = vsub.f32 %v72_v1, %v125_v24 }
  0x44   :  { %1306 = vmatpush3.bf16.msra.mxu1 %v1305_v29  ;;  %v267_v37 = vsub.f32 %v1665_v17, %v2056_v7  ;;  %v274_v59 = vsub.f32 %v1676_v42, %v2058_v57  ;;  %v179_v13 = vand.u32 4294901760, %v90_v3  ;;  %v182_v47 = vand.u32 4294901760, %v91_v0 }
  0x45   :  { %2101 = vst [vmem:[#allocation12_spill] sm:$0xff] %v1723_v23  ;;  %v1307_v34 = vpack.c.bf16 %v387_v19, %v380_v8  ;;  %1286 = vmatpush3.bf16.msra.mxu0 %v1723_v23  ;;  %v2061_v52 = vand.u32 4294901760, %v1680_v50  ;;  %v2063_v1 = vand.u32 4294901760, %v1689_v60  ;;  %v131_v24 = vand.u32 4294901760, %v74_v6  ;;  %v61_v23 = vld [vmem:[#allocation2 + $0x18] sm:$0xff] }
  0x46   :  { %v1736_v56 = vsub.f32 %v73_v18, %v128_v2  ;;  %v268_v29 = vand.u32 4294901760, %v267_v37  ;;  %v275_v33 = vand.u32 4294901760, %v274_v59  ;;  %v1738_v7 = vpack.c.bf16 %v182_v47, %v179_v13  ;;  %v76_v37 = vld [vmem:[#allocation5 + $0x70] sm:$0xff] }
  0x47   :  { %1308 = vmatprep.subr.bf16.mxu1 %v1307_v34  ;;  %v1740_v10 = vsub.f32 %v90_v3, %v179_v13  ;;  %v393_v8 = vsub.f32 %v1680_v50, %v2061_v52  ;;  %v400_v19 = vsub.f32 %v1689_v60, %v2063_v1  ;;  %v134_v57 = vand.u32 4294901760, %v75_v11  ;;  %v77_v1 = vld [vmem:[#allocation5 + $0x78] sm:$0xff] }
  0x48   :  { %2102 = vst [vmem:[#allocation13_spill] sm:$0xff] %v1738_v7  ;;  %v1309_v18 = vpack.c.bf16 %v275_v33, %v268_v29  ;;  %1288 = vmatprep.subr.bf16.mxu0 %v1738_v7  ;;  %v1749_v2 = vsub.f32 %v91_v0, %v182_v47  ;;  %v2066_v34 = vand.u32 4294901760, %v1695_v5  ;;  %v2068_v3 = vand.u32 4294901760, %v1706_v30 }
  0x49   :  { %v394_v59 = vand.u32 4294901760, %v393_v8  ;;  %v401_v13 = vand.u32 4294901760, %v400_v19  ;;  %v1753_v52 = vpack.c.bf16 %v134_v57, %v131_v24  ;;  %v1755_v53 = vsub.f32 %v74_v6, %v131_v24 }
  0x4a   :  { %1310 = vmatpush3.bf16.msra.mxu1 %v1309_v18  ;;  %v281_v33 = vsub.f32 %v1695_v5, %v2066_v34  ;;  %v288_v0 = vsub.f32 %v1706_v30, %v2068_v3  ;;  %v185_v47 = vand.u32 4294901760, %v92_v9  ;;  %v188_v29 = vand.u32 4294901760, %v93_v54 }
  0x4b   :  { %2103 = vst [vmem:[#allocation14_spill] sm:$0xff] %v1753_v52  ;;  %v1311_v36 = vpack.c.bf16 %v401_v13, %v394_v59  ;;  %1290 = vmatpush3.bf16.msra.mxu0 %v1753_v52  ;;  %v2072_v8 = vand.u32 4294901760, %v1710_v51  ;;  %v2073_v6 = vand.u32 4294901760, %v1719_v55  ;;  %v137_v24 = vand.u32 4294901760, %v76_v37 }
  0x4c   :  { %v1766_v19 = vsub.f32 %v75_v11, %v134_v57  ;;  %v282_v18 = vand.u32 4294901760, %v281_v33  ;;  %v289_v35 = vand.u32 4294901760, %v288_v0  ;;  %v1768_v34 = vpack.c.bf16 %v188_v29, %v185_v47 }
  0x4d   :  { %1312 = vmatprep.subr.bf16.mxu1 %v1311_v36  ;;  %v1770_v44 = vsub.f32 %v92_v9, %v185_v47  ;;  %v407_v59 = vsub.f32 %v1710_v51, %v2072_v8  ;;  %v414_v13 = vsub.f32 %v1719_v55, %v2073_v6  ;;  %v140_v3 = vand.u32 4294901760, %v77_v1  ;;  %v58_v9 = vld [vmem:[#allocation2] sm:$0xff] }
  0x4e   :  { %2104 = vst [vmem:[#allocation15_spill] sm:$0xff] %v1768_v34  ;;  %v1313_v52 = vpack.c.bf16 %v289_v35, %v282_v18  ;;  %1292 = vmatprep.subr.bf16.mxu0 %v1768_v34  ;;  %v1779_v11 = vsub.f32 %v93_v54, %v188_v29  ;;  %v2074_v57 = vand.u32 4294901760, %v1725_v61  ;;  %v2075_v36 = vand.u32 4294901760, %v1736_v56 }
  0x4f   :  { %v408_v33 = vand.u32 4294901760, %v407_v59  ;;  %v415_v0 = vand.u32 4294901760, %v414_v13  ;;  %v1783_v47 = vpack.c.bf16 %v140_v3, %v137_v24  ;;  %v1785_v8 = vsub.f32 %v76_v37, %v137_v24 }
  0x50   :  { %1314 = vmatpush3.bf16.msra.mxu1 %v1313_v52  ;;  %v295_v35 = vsub.f32 %v1725_v61, %v2074_v57  ;;  %v302_v54 = vsub.f32 %v1736_v56, %v2075_v36  ;;  %v1793_v29 = vand.u32 4294901760, %v59_v41  ;;  %v2078_v18 = vand.u32 4294901760, %v1740_v10 }
  0x51   :  { %2105 = vst [vmem:[#allocation16_spill] sm:$0xff] %v1783_v47  ;;  %v1315_v6 = vpack.c.bf16 %v415_v0, %v408_v33  ;;  %1294 = vmatpush3.bf16.msra.mxu0 %v1783_v47  ;;  %v2084_v59 = vand.u32 4294901760, %v1749_v2  ;;  %v1327_v52 = vpack.c.bf16 %v1610_v32, %v1608_v31  ;;  %v1800_v37 = vand.u32 4294901760, %v58_v9 }
  0x52   :  { %2106 = vst [vmem:[#allocation17_spill] sm:$0xff] %v1793_v29  ;;  %v296_v24 = vand.u32 4294901760, %v295_v35  ;;  %v303_v13 = vand.u32 4294901760, %v302_v54  ;;  %v1803_v57 = vsub.f32 %v59_v41, %v1793_v29  ;;  %v421_v36 = vsub.f32 %v1740_v10, %v2078_v18  ;;  %446 = vmatprep.mubr.f32.mxu1 %v1793_v29 }
  0x53   :  { %1316 = vmatprep.subr.bf16.mxu1 %v1315_v6  ;;  %v428_v33 = vsub.f32 %v1749_v2, %v2084_v59  ;;  %1328 = vmatprep.subr.bf16.mxu0 %v1327_v52  ;;  %v1813_v0 = vsub.f32 %v58_v9, %v1800_v37  ;;  %v2083_v35 = vand.u32 4294901760, %v1755_v53  ;;  %v2085_v41 = vand.u32 4294901760, %v1766_v19 }
  0x54   :  { %v1817_v54 = vsub.f32 %v77_v1, %v140_v3  ;;  %v1317_v47 = vpack.c.bf16 %v303_v13, %v296_v24  ;;  %v2086_v18 = vand.u32 4294901760, %v1803_v57  ;;  %v422_v34 = vand.u32 4294901760, %v421_v36 }
  0x55   :  { %2107 = vst [vmem:[#allocation18_spill] sm:$0xff] %v1813_v0  ;;  %v429_v29 = vand.u32 4294901760, %v428_v33  ;;  %v2091_v6 = vand.u32 4294901760, %v1813_v0  ;;  %v309_v52 = vsub.f32 %v1755_v53, %v2083_v35  ;;  %v316_v9 = vsub.f32 %v1766_v19, %v2085_v41 }
  0x56   :  { %1318 = vmatpush3.bf16.msra.mxu1 %v1317_v47  ;;  %v193_v1 = vsub.f32 %v1803_v57, %v2086_v18  ;;  %v1329_v3 = vpack.c.bf16 %v1594_v21, %v1590_v15  ;;  %v2092_v36 = vand.u32 4294901760, %v1770_v44  ;;  %v2093_v24 = vand.u32 4294901760, %v1779_v11 }
  0x57   :  { %v1319_v13 = vpack.c.bf16 %v429_v29, %v422_v34  ;;  %v199_v33 = vsub.f32 %v1813_v0, %v2091_v6  ;;  %v310_v35 = vand.u32 4294901760, %v309_v52  ;;  %v317_v59 = vand.u32 4294901760, %v316_v9 }
  0x58   :  { %v194_v41 = vand.u32 4294901760, %v193_v1  ;;  %v435_v47 = vsub.f32 %v1770_v44, %v2092_v36  ;;  %v442_v18 = vsub.f32 %v1779_v11, %v2093_v24  ;;  %v2095_v7 = vand.u32 4294901760, %v1785_v8 }
  0x59   :  { %1320 = vmatprep.subr.bf16.mxu1 %v1319_v13  ;;  %v200_v34 = vand.u32 4294901760, %v199_v33  ;;  %v1321_v29 = vpack.c.bf16 %v317_v59, %v310_v35  ;;  %v1331_v6 = vpack.c.bf16 %v1601_v26, %v1599_v25  ;;  %v2094_v52 = vand.u32 4294901760, %v1817_v54  ;;  %v60_v59 = vld [vmem:[#allocation2 + $0x10] sm:$0xff] }
  0x5a   :  { %195 = vmatprep.mubr.f32.mxu0 %v194_v41  ;;  %v436_v9 = vand.u32 4294901760, %v435_v47  ;;  %v443_v1 = vand.u32 4294901760, %v442_v18  ;;  %v323_v36 = vsub.f32 %v1785_v8, %v2095_v7  ;;  %v1853_v33 = vand.u32 4294901760, %v61_v23 }
  0x5b   :  { %201 = vmatmul.mubr.f32.vlgmr.msra.gmra.mrb[0].mxu0 %v200_v34  ;;  %1322 = vmatpush3.bf16.msra.mxu1 %v1321_v29  ;;  %v330_v13 = vsub.f32 %v1817_v54, %v2094_v52  ;;  %v1333_v41 = vpack.c.bf16 %v1615_v38, %v1605_v28  ;;  %v1335_v47 = vpack.c.bf16 %v1622_v43, %v1619_v40  ;;  %v1862_v29 = vand.u32 4294901760, %v60_v59 }
  0x5c   :  { %1330 = vmatpush3.bf16.msra.mxu0 %v1329_v3  ;;  %v1323_v35 = vpack.c.bf16 %v443_v1, %v436_v9  ;;  %v324_v24 = vand.u32 4294901760, %v323_v36  ;;  %v1860_v34 = vsub.f32 %v61_v23, %v1853_v33  ;;  %v1337_v3 = vpack.c.bf16 %v1645_v58, %v1627_v46 }
  0x5d   :  { %1332 = vmatprep.subr.bf16.mxu0 %v1331_v6  ;;  %v331_v18 = vand.u32 4294901760, %v330_v13  ;;  %v1339_v36 = vpack.c.bf16 %v1661_v12, %v1649_v63  ;;  %v2108_v9 = vand.u32 4294901760, %v1608_v31  ;;  %v2109_v6 = vand.u32 4294901760, %v1610_v32 }
  0x5e   :  { %1324 = vmatprep.subr.bf16.mxu1 %v1323_v35  ;;  %v207_v13 = vand.u32 4294901760, %v1860_v34  ;;  %v1874_v23 = vsub.f32 %v60_v59, %v1862_v29  ;;  %v2110_v35 = vand.u32 4294901760, %v1590_v15  ;;  %v2112_v7 = vand.u32 4294901760, %v1599_v25 }
  0x5f   :  { %v1325_v52 = vpack.c.bf16 %v331_v18, %v324_v24  ;;  %v1391_v1 = vpack.c.bf16 %v2109_v6, %v2108_v9  ;;  %v2111_v24 = vand.u32 4294901760, %v1594_v21  ;;  %v2113_v0 = vand.u32 4294901760, %v1601_v26 }
  0x60   :  { %1334 = vmatpush3.bf16.msra.mxu0 %v1333_v41  ;;  %v2114_v31 = vand.u32 4294901760, %v1605_v28  ;;  %v2115_v32 = vand.u32 4294901760, %v1615_v38  ;;  %v2116_v59 = vand.u32 4294901760, %v1619_v40  ;;  %v2117_v9 = vand.u32 4294901760, %v1622_v43 }
  0x61   :  { %v1393_v18 = vpack.c.bf16 %v2111_v24, %v2110_v35  ;;  %v1395_v48 = vpack.c.bf16 %v2113_v0, %v2112_v7  ;;  %1326 = vmatpush3.bf16.msra.mxu1 %v1325_v52  ;;  %1336 = vmatprep.subr.bf16.mxu0 %v1335_v47  ;;  %v2118_v21 = vand.u32 4294901760, %v1627_v46  ;;  %v2119_v6 = vand.u32 4294901760, %v1645_v58 }
  0x62   :  { %v1397_v41 = vpack.c.bf16 %v2115_v32, %v2114_v31  ;;  %v1399_v15 = vpack.c.bf16 %v2117_v9, %v2116_v59  ;;  %1360 = vmatprep.subr.bf16.mxu1 %v1588_v14  ;;  %v208_v26 = vsub.f32 %v1860_v34, %v207_v13  ;;  %v213_v28 = vand.u32 4294901760, %v1874_v23 }
  0x63   :  { %v1896_v25 = vpack.c.bf16 %v2119_v6, %v2118_v21  ;;  %v2120_v38 = vand.u32 4294901760, %v1649_v63  ;;  %v2121_v40 = vand.u32 4294901760, %v1661_v12  ;;  %v2122_v7 = vand.u32 4294901760, %v1665_v17  ;;  %v2130_v21 = vld [vmem:[#allocation12_spill] sm:$0xff]  ;;  %v2131_v6 = vld [vmem:[#allocation13_spill] sm:$0xff] }
  0x64   :  { %v2123_v46 = vand.u32 4294901760, %v1676_v42  ;;  %v2124_v0 = vand.u32 4294901760, %v1680_v50  ;;  %v2125_v52 = vand.u32 4294901760, %v1689_v60  ;;  %v2126_v35 = vand.u32 4294901760, %v1695_v5  ;;  %448 = vmatmul.mubr.f32.vlgmr.msra.gmra.mrb[0].mxu1 %v1800_v37  ;;  %1338 = vmatpush3.bf16.msra.mxu0 %v1337_v3 }
  0x65   :  { %v1403_v43 = vpack.c.bf16 %v2121_v40, %v2120_v38  ;;  %v2127_v24 = vand.u32 4294901760, %v1706_v30  ;;  %v1341_v12 = vpack.c.bf16 %v1676_v42, %v1665_v17  ;;  %v209_v31 = vand.u32 4294901760, %v208_v26  ;;  %1362 = vmatpush3.bf16.msra.mxu1 %v1592_v20  ;;  %1340 = vmatprep.subr.bf16.mxu0 %v1339_v36  ;;  %v2129_v36 = vld [vmem:[#allocation11_spill] sm:$0xff]  ;;  %v2132_v26 = vld [vmem:[#allocation18_spill] sm:$0xff] }
  0x66   :  { %v1911_v58 = vpack.c.bf16 %v2123_v46, %v2122_v7  ;;  %v1917_v47 = vpack.c.bf16 %v2125_v52, %v2124_v0  ;;  %v214_v32 = vsub.f32 %v1874_v23, %v213_v28  ;;  %v1343_v59 = vpack.c.bf16 %v1689_v60, %v1680_v50  ;;  %1364 = vmatprep.subr.bf16.mxu1 %v1596_v22  ;;  %v2133_v38 = vld [vmem:[#allocation14_spill] sm:$0xff]  ;;  %v2134_v40 = vld [vmem:[#allocation15_spill] sm:$0xff]  ;;  %v2135_v7 = vld [vmem:[#allocation17_spill] sm:$0xff] }
  0x67   :  { %v1923_v63 = vpack.c.bf16 %v2127_v24, %v2126_v35  ;;  %210 = vmatprep.mubr.f32.mxu0 %v209_v31  ;;  %453 = vmatprep.mubr.f32.mxu1 %v1853_v33  ;;  %v1345_v17 = vpack.c.bf16 %v1706_v30, %v1695_v5  ;;  %v1347_v42 = vpack.c.bf16 %v1719_v55, %v1710_v51  ;;  %v2128_v50 = vand.u32 4294901760, %v1803_v57  ;;  %v2136_v46 = vld [vmem:[#allocation16_spill] sm:$0xff] }
  0x68   :  { %v215_v9 = vand.u32 4294901760, %v214_v32  ;;  %1342 = vmatpush3.bf16.msra.mxu0 %v1341_v12  ;;  %455 = vmatmul.mubr.f32.gmra.mrb[2].mxu1 %v1862_v29  ;;  %v1349_v60 = vpack.c.bf16 %v1736_v56, %v1725_v61  ;;  %v1351_v5 = vpack.c.bf16 %v1749_v2, %v1740_v10  ;;  %v1353_v30 = vpack.c.bf16 %v1766_v19, %v1755_v53 }
  0x69   :  { %1366 = vmatpush3.bf16.msra.mxu1 %v1603_v27  ;;  %1344 = vmatprep.subr.bf16.mxu0 %v1343_v59  ;;  %v1357_v3 = vpack.c.bf16 %v1817_v54, %v1785_v8 }
  0x6a   :  { %1368 = vmatprep.subr.bf16.mxu1 %v1617_v39  ;;  %216 = vmatmul.mubr.f32.gmra.mrb[2].mxu0 %v215_v9 }
  0x6b   :  { %590 = vmatprep.mubr.f32.mxu0 %v1803_v57  ;;  %706 = vmatprep.mubr.f32.mxu1 %v2128_v50  ;;  %v1355_v57 = vpack.c.bf16 %v1779_v11, %v1770_v44 }
  0x6c   :  { %1346 = vmatpush3.bf16.msra.mxu0 %v1345_v17 }
  0x6d   :  { %1370 = vmatpush3.bf16.msra.mxu1 %v1625_v45  ;;  %1348 = vmatprep.subr.bf16.mxu0 %v1347_v42 }
  0x6e   :  { %1372 = vmatprep.subr.bf16.mxu1 %v1647_v62 }
  0x70   :  { %1350 = vmatpush3.bf16.msra.mxu0 %v1349_v60 }
  0x71   :  { %1374 = vmatpush3.bf16.msra.mxu1 %v1663_v16  ;;  %1352 = vmatprep.subr.bf16.mxu0 %v1351_v5 }
  0x72   :  { %1376 = vmatprep.subr.bf16.mxu1 %v1678_v49 }
  0x74   :  { %1354 = vmatpush3.bf16.msra.mxu0 %v1353_v30 }
  0x75   :  { %1378 = vmatpush3.bf16.msra.mxu1 %v1693_v4  ;;  %1356 = vmatprep.subr.bf16.mxu0 %v1355_v57 }
  0x76   :  { %1380 = vmatprep.subr.bf16.mxu1 %v2129_v36 }
  0x78   :  { %1358 = vmatpush3.bf16.msra.mxu0 %v1357_v3 }
  0x79   :  { %1382 = vmatpush3.bf16.msra.mxu1 %v2130_v21  ;;  %1392 = vmatprep.subr.bf16.mxu0 %v1391_v1  ;;  %v2137_v1 = vand.u32 4294901760, %v2132_v26 }
  0x7a   :  { %1384 = vmatprep.subr.bf16.mxu1 %v2131_v6 }
  0x7b   :  { %593 = vmatmul.mubr.f32.vlgmr.msra.gmra.mrb[4].mxu0 %v2132_v26 }
  0x7c   :  { %1394 = vmatpush3.bf16.msra.mxu0 %v1393_v18  ;;  %599 = vmatprep.mubr.f32.mxu0 %v1860_v34  ;;  %v2141_v34 = vand.u32 4294901760, %v1736_v56 }
  0x7d   :  { %1386 = vmatpush3.bf16.msra.mxu1 %v2133_v38  ;;  %1396 = vmatprep.subr.bf16.mxu0 %v1395_v48  ;;  %v2139_v48 = vand.u32 4294901760, %v1719_v55 }
  0x7e   :  { %1388 = vmatprep.subr.bf16.mxu1 %v2134_v40 }
  0x7f   :  { %602 = vmatmul.mubr.f32.gmra.mrb[6].mxu0 %v1874_v23  ;;  %v2145_v23 = vand.u32 4294901760, %v1766_v19 }
  0x80   :  { %1398 = vmatpush3.bf16.msra.mxu0 %v1397_v41  ;;  %887 = vmatprep.mubr.f32.mxu0 %v2135_v7 }
  0x81   :  { %1390 = vmatpush3.bf16.msra.mxu1 %v2136_v46  ;;  %1400 = vmatprep.subr.bf16.mxu0 %v1399_v15 }
  0x82   :  { %1424 = vmatprep.subr.bf16.mxu1 %v1588_v14  ;;  %v2138_v14 = vand.u32 4294901760, %v1710_v51  ;;  %v2143_v51 = vand.u32 4294901760, %v1749_v2 }
  0x84   :  { %710 = vmatmul.mubr.f32.vlgmr.msra.gmra.mrb[4].mxu1 %v2137_v1  ;;  %1402 = vmatpush3.bf16.msra.mxu0 %v1896_v25 }
  0x85   :  { %1426 = vmatpush3.bf16.msra.mxu1 %v1592_v20  ;;  %717 = vmatprep.mubr.f32.mxu1 %v207_v13  ;;  %v1411_v20 = vpack.c.bf16 %v2139_v48, %v2138_v14 }
  0x86   :  { %1404 = vmatprep.subr.bf16.mxu0 %v1403_v43  ;;  %1428 = vmatprep.subr.bf16.mxu1 %v1596_v22  ;;  %v2140_v22 = vand.u32 4294901760, %v1725_v61  ;;  %v2146_v61 = vand.u32 4294901760, %v1770_v44 }
  0x88   :  { %721 = vmatmul.mubr.f32.gmra.mrb[6].mxu1 %v213_v28  ;;  %1406 = vmatpush3.bf16.msra.mxu0 %v1911_v58  ;;  %v1413_v13 = vpack.c.bf16 %v2141_v34, %v2140_v22 }
  0x89   :  { %1430 = vmatpush3.bf16.msra.mxu1 %v1603_v27  ;;  %1408 = vmatprep.subr.bf16.mxu0 %v1917_v47  ;;  %v2142_v27 = vand.u32 4294901760, %v1740_v10  ;;  %v2148_v10 = vand.u32 4294901760, %v1785_v8 }
  0x8a   :  { %1432 = vmatprep.subr.bf16.mxu1 %v1617_v39  ;;  %998 = vmatprep.mubr.f32.mxu1 %v2135_v7  ;;  %v2144_v39 = vand.u32 4294901760, %v1755_v53 }
  0x8b   :  { %v1415_v55 = vpack.c.bf16 %v2143_v51, %v2142_v27 }
  0x8c   :  { %1410 = vmatpush3.bf16.msra.mxu0 %v1923_v63  ;;  %v1417_v18 = vpack.c.bf16 %v2145_v23, %v2144_v39 }
  0x8d   :  { %1434 = vmatpush3.bf16.msra.mxu1 %v1625_v45  ;;  %1412 = vmatprep.subr.bf16.mxu0 %v1411_v20  ;;  %v2147_v45 = vand.u32 4294901760, %v1779_v11 }
  0x8e   :  { %1436 = vmatprep.subr.bf16.mxu1 %v1647_v62  ;;  %v2149_v62 = vand.u32 4294901760, %v1817_v54 }
  0x8f   :  { %v1419_v56 = vpack.c.bf16 %v2147_v45, %v2146_v61 }
  0x90   :  { %1414 = vmatpush3.bf16.msra.mxu0 %v1413_v13  ;;  %v1421_v2 = vpack.c.bf16 %v2149_v62, %v2148_v10 }
  0x91   :  { %1438 = vmatpush3.bf16.msra.mxu1 %v1663_v16  ;;  %1416 = vmatprep.subr.bf16.mxu0 %v1415_v55 }
  0x92   :  { %1440 = vmatprep.subr.bf16.mxu1 %v1678_v49 }
  0x94   :  { %1418 = vmatpush3.bf16.msra.mxu0 %v1417_v18 }
  0x95   :  { %1442 = vmatpush3.bf16.msra.mxu1 %v1693_v4  ;;  %1420 = vmatprep.subr.bf16.mxu0 %v1419_v56 }
  0x96   :  { %1444 = vmatprep.subr.bf16.mxu1 %v2129_v36 }
  0x98   :  { %1422 = vmatpush3.bf16.msra.mxu0 %v1421_v2 }
  0x99   :  { %1446 = vmatpush3.bf16.msra.mxu1 %v2130_v21 }
  0x9a   :  { %1448 = vmatprep.subr.bf16.mxu1 %v2131_v6 }
  0x9b   :  { %889 = vmatmul.mubr.f32.vlgmr.msra.gmra.mrb[8].mxu0 %v1800_v37 }
  0x9c   :  { %894 = vmatprep.mubr.f32.mxu0 %v1853_v33 }
  0x9d   :  { %1450 = vmatpush3.bf16.msra.mxu1 %v2133_v38  ;;  %v1034_v38 = vld [vmem:[%s2048_s2] ss:$0 sm:$0xff] }
  0x9e   :  { %1452 = vmatprep.subr.bf16.mxu1 %v2134_v40 }
  0x9f   :  { %896 = vmatmul.mubr.f32.gmra.mrb[10].mxu0 %v1862_v29 }
  0xa1   :  { %1454 = vmatpush3.bf16.msra.mxu1 %v2136_v46 }
  0xa4   :  { %1000 = vmatmul.mubr.f32.vlgmr.msra.gmra.mrb[8].mxu1 %v1800_v37 }
  0xa5   :  { %1005 = vmatprep.mubr.f32.mxu1 %v1853_v33 }
  0xa8   :  { %1007 = vmatmul.mubr.f32.gmra.mrb[10].mxu1 %v1862_v29 }
 0x12e   :  { %v1067_v44 = vpop.f32.mrb[0].mxu0 }
 0x12f   :  { %v1068_v53 = vpop.f32.mrb[1].mxu0 }
 0x130   :  { %v1069_v16 = vadd.f32 %v1068_v53, %v1067_v44 }
 0x137   :  { %v1105_v49 = vpop.f32.mrb[0].mxu1 }
 0x138   :  { %v1106_v4 = vpop.f32.mrb[1].mxu1 }
 0x139   :  { %v1107_v8 = vadd.f32 %v1106_v4, %v1105_v49 }
 0x13b   :  { %v450_v19 = vadd.f32 %v1107_v8, %v1069_v16  ;;  %v1108_v11 = vpop.f32.mrb[2].mxu1 }
 0x13c   :  { %v1109_v54 = vpop.f32.mrb[3].mxu1 }
 0x13d   :  { %v1070_v41 = vpop.f32.mrb[2].mxu0  ;;  %v1110_v15 = vadd.f32 %v1109_v54, %v1108_v11 }
 0x13e   :  { %v1071_v25 = vpop.f32.mrb[3].mxu0 }
 0x13f   :  { %v1072_v28 = vadd.f32 %v1071_v25, %v1070_v41 }
 0x141   :  { %v457_v43 = vadd.f32 %v1110_v15, %v1072_v28 }
 0x14e   :  { %v1143_v58 = vpop.f32.mrb[4].mxu0 }
 0x14f   :  { %v1144_v37 = vpop.f32.mrb[5].mxu0 }
 0x150   :  { %v1145_v0 = vadd.f32 %v1144_v37, %v1143_v58 }
 0x152   :  { %v595_v33 = vadd.f32 %v1145_v0, %v450_v19  ;;  %v1146_v52 = vpop.f32.mrb[6].mxu0 }
 0x153   :  { %v1147_v29 = vpop.f32.mrb[7].mxu0 }
 0x154   :  { %v1148_v47 = vadd.f32 %v1147_v29, %v1146_v52 }
 0x156   :  { %v604_v35 = vadd.f32 %v1148_v47, %v457_v43 }
 0x157   :  { %v1181_v24 = vpop.f32.mrb[4].mxu1 }
 0x158   :  { %v1182_v63 = vpop.f32.mrb[5].mxu1 }
 0x159   :  { %v1183_v12 = vadd.f32 %v1182_v63, %v1181_v24 }
 0x15b   :  { %v712_v31 = vadd.f32 %v1183_v12, %v595_v33  ;;  %v1184_v32 = vpop.f32.mrb[6].mxu1 }
 0x15c   :  { %v1185_v59 = vpop.f32.mrb[7].mxu1 }
 0x15d   :  { %v1186_v9 = vadd.f32 %v1185_v59, %v1184_v32 }
 0x15f   :  { %v723_v17 = vadd.f32 %v1186_v9, %v604_v35 }
 0x16e   :  { %v1219_v42 = vpop.f32.mrb[8].mxu0 }
 0x16f   :  { %v1220_v50 = vpop.f32.mrb[9].mxu0 }
 0x170   :  { %v1221_v60 = vadd.f32 %v1220_v50, %v1219_v42 }
 0x172   :  { %v891_v5 = vadd.f32 %v1221_v60, %v712_v31  ;;  %v1222_v30 = vpop.f32.mrb[10].mxu0 }
 0x173   :  { %v1223_v57 = vpop.f32.mrb[11].mxu0 }
 0x174   :  { %v1224_v3 = vadd.f32 %v1223_v57, %v1222_v30 }
 0x176   :  { %v898_v36 = vadd.f32 %v1224_v3, %v723_v17 }
 0x177   :  { %v1257_v21 = vpop.f32.mrb[8].mxu1 }
 0x178   :  { %v1258_v6 = vpop.f32.mrb[9].mxu1 }
 0x179   :  { %v1259_v26 = vadd.f32 %v1258_v6, %v1257_v21 }
 0x17b   :  { %v1002_v40 = vadd.f32 %v1259_v26, %v891_v5  ;;  %v1260_v7 = vpop.f32.mrb[10].mxu1 }
 0x17c   :  { %v1261_v46 = vpop.f32.mrb[11].mxu1 }
 0x17d   :  { %v1012_v1 = vadd.f32 %v1034_v38, %v1002_v40  ;;  %v1262_v14 = vadd.f32 %v1261_v46, %v1260_v7 }
 0x17f   :  { %1014 = vst [vmem:[#allocation7] sm:$0xff] %v1012_v1  ;;  %v1009_v48 = vadd.f32 %v1262_v14, %v898_v36 }
 0x181   :  { %v1013_v20 = vadd.f32 %v1034_v38, %v1009_v48 }
 0x183   :  { %1015 = vst [vmem:[#allocation7 + $0x8] sm:$0xff] %v1013_v20 }
 0x184   :  { %1517 = shalt.err (!%p1514_p6)
}
 0x185   :  { %s1518_s17 = scalar_lea.hbm %s2049_s3, 256 }
 0x186   :  { %p1519_p7 = scmp.ne.s32.totalorder %s2049_s3, %s1518_s17  ;;  %p1522_p8 = scmp.lt.u32.totalorder %s1518_s17, %s2049_s3 }
 0x188   :  { %p1524_p9 = pnand %p1522_p8, %p1519_p7 }
 0x18a   :  { %1527 = shalt.err (!%p1524_p9)
}
 0x18b   :  { %1027 = dma.vmem_to_hbm [thread:$0]  %s1022_s14, 256, %s2049_s3, [#allocation4], %s1538_s0, %s1538_s0, %s1539_s9  }
 0x18c   :  { %1532 = dma.done.wait [#allocation4], 256  }
 0x18d   :  { %1533 = vsyncadd [#allocation4], 4294967040 }
 0x18e   :  { %1031 = vsyncpa [#allocation3], 1 }
 0x18f   :  { %1032 = vsyncpa [#allocation6], 1 }
 0x190   :  { %1033 = vsyncpa [#allocation4], 1 }

</bundles_post_ra>
